<compile_context>
chip_gen: v6e
topology: v6e:2x2x1
jax: 0.10.0
libtpu: 0.0.40
codegen_flags: <defaults>
</compile_context>

<pallas_src>
import functools

import jax
import jax.numpy as jnp
from jax.experimental import pallas as pl
from jax.experimental.pallas import tpu as pltpu

EPS = 1e-5


# ----------------------------- VMEM budgeting -----------------------------
def _vmem_budget_bytes():
    """Per-generation VMEM cap (v5e/v6e: 128 MiB, v7x: 64 MiB/TC) with headroom."""
    cap = 128 * 1024 * 1024
    try:
        cap = int(getattr(pltpu.get_tpu_info(), "vmem_capacity_bytes", cap))
    except Exception:
        pass
    return min((cap * 3) // 4, 100 * 1024 * 1024)


def _compiler_params(vmem_limit):
    return pltpu.CompilerParams(dimension_semantics=("parallel",),
                                vmem_limit_bytes=int(vmem_limit))


def _vmem_estimate(nb, H1, W1, Hs, Ws, Cin, Cout, stride):
    """Rough per-step VMEM bytes: double-buffered blocks + scratch + in-kernel temps."""
    bf, f4 = 2, 4
    s2 = stride * stride
    pix = nb * H1 * W1
    p1 = (2 * nb * s2 * Hs * Ws * Cin * bf          # phase input, double-buffered
          + 2 * pix * Cout * bf                     # y1 out, double-buffered
          + pix * (Cout * f4 + Cin * bf)            # f32 acc + one tap window
          + 9 * Cin * Cout * bf)                    # resident weight
    p2 = (4 * pix * Cout * bf                       # y1 in + y2 out, double-buffered
          + nb * (H1 + 2) * (W1 + 2) * Cout * bf    # halo scratch
          + pix * Cout * (f4 + bf)                  # f32 acc + one tap window
          + 9 * Cout * Cout * bf)                   # resident weight
    p3 = (2 * pix * (Cout + Cin) * bf               # y2 + shortcut, double-buffered
          + 3 * pix * Cout * f4                     # f32 out (x2) + temp
          + Cin * Cout * bf)
    return max(p1, p2, p3)


# --------------------- pass 1: conv1 + bn1 partial statistics ---------------------
def _conv1_stats_kernel(xph_ref, w1_ref, y1_ref, st_ref,
                        *, nb, H1, W1, Cin, Cout, stride):
    Mt = nb * H1 * W1
    acc = None
    # 9 shifted-window matmuls accumulated in f32 (replaces lane-axis im2col concat).
    for kh in range(3):
        for kw in range(3):
            t = kh * 3 + kw
            p = (kh % stride) * stride + (kw % stride)
            r0, c0 = kh // stride, kw // stride
            win = xph_ref[:, p, r0:r0 + H1, c0:c0 + W1, :]            # (nb,H1,W1,Cin) bf16
            d = jnp.dot(win.reshape(Mt, Cin),
                        w1_ref[t * Cin:(t + 1) * Cin, :],
                        preferred_element_type=jnp.float32)
            acc = d if acc is None else acc + d
    # single-pass BN statistics (sum, sum of squares), f32.
    # TODO(synk): for very large M consider a compensated / mean-shifted sum.
    ssum = jnp.sum(acc, axis=0, keepdims=True)
    ssq = jnp.sum(acc * acc, axis=0, keepdims=True)
    st_ref[...] = jnp.concatenate([ssum, ssq], axis=0)[None]
    y1_ref[...] = acc.reshape(nb, H1, W1, Cout).astype(y1_ref.dtype)


# ------------- pass 2: bn1 + relu + conv2 (fused) + bn2 partial statistics -------------
def _bn1_relu_conv2_stats_kernel(y1_ref, a1_ref, c1_ref, w2_ref,
                                 y2_ref, st_ref, pad_ref,
                                 *, nb, H1, W1, Cout):
    Mt = nb * H1 * W1
    # bn1 folded into scale/shift (computed in the wrapper), then ReLU -> bf16.
    z = y1_ref[...].astype(jnp.float32) * a1_ref[...] + c1_ref[...]
    z = jnp.maximum(z, 0.0).astype(pad_ref.dtype)

    # Zero ONLY the 1-wide halo.  Done every step (cheap small stores): gating on
    # program_id(0)==0 would be unsafe under megacore partitioning of the
    # "parallel" batch axis (each core owns its own scratch and a disjoint
    # program-id range, so the other core would never initialize its halo).
    zrow = jnp.zeros((nb, 1, W1 + 2, Cout), pad_ref.dtype)
    zcol = jnp.zeros((nb, H1, 1, Cout), pad_ref.dtype)
    pad_ref[:, 0:1, :, :] = zrow
    pad_ref[:, H1 + 1:H1 + 2, :, :] = zrow
    pad_ref[:, 1:H1 + 1, 0:1, :] = zcol
    pad_ref[:, 1:H1 + 1, W1 + 1:W1 + 2, :] = zcol
    pad_ref[:, 1:H1 + 1, 1:W1 + 1, :] = z

    # conv2 (3x3, stride 1, pad 1): 9 per-tap matmuls, windows sliced straight
    # from the scratch ref (no full pad_ref read-back).
    acc = None
    for kh in range(3):
        for kw in range(3):
            t = kh * 3 + kw
            win = pad_ref[:, kh:kh + H1, kw:kw + W1, :]               # (nb,H1,W1,Cout) bf16
            d = jnp.dot(win.reshape(Mt, Cout),
                        w2_ref[t * Cout:(t + 1) * Cout, :],
                        preferred_element_type=jnp.float32)
            acc = d if acc is None else acc + d
    ssum = jnp.sum(acc, axis=0, keepdims=True)
    ssq = jnp.sum(acc * acc, axis=0, keepdims=True)
    st_ref[...] = jnp.concatenate([ssum, ssq], axis=0)[None]
    y2_ref[...] = acc.reshape(nb, H1, W1, Cout).astype(y2_ref.dtype)


# --------------------- pass 3: bn2 + shortcut add + relu ---------------------
def _bn2_add_relu_kernel(*refs, nb, H1, W1, Cin, Cout, use_proj):
    if use_proj:
        y2_ref, a2_ref, c2_ref, xsc_ref, wsc_ref, out_ref = refs
    else:
        y2_ref, a2_ref, c2_ref, xsc_ref, out_ref = refs
    y2 = y2_ref[...].astype(jnp.float32) * a2_ref[...] + c2_ref[...]
    if use_proj:
        xs = xsc_ref[...].reshape(nb * H1 * W1, Cin)                  # bf16
        sc = jnp.dot(xs, wsc_ref[...], preferred_element_type=jnp.float32)
        sc = sc.reshape(nb, H1, W1, Cout)
    else:
        sc = xsc_ref[...].astype(jnp.float32)                         # bf16 identity
    out_ref[...] = jnp.maximum(y2 + sc, 0.0)


# ------------------------------- wrapper -------------------------------
def block_forward(x, params, stride, *, batch_tile=None):
    """x: (N, Cin, H, W) float32 NCHW. Returns (N, Cout, H_out, W_out) float32."""
    N, Cin, H, W = x.shape
    w1, g1, b1 = params["w1"], params["g1"], params["b1"]
    w2, g2, b2 = params["w2"], params["g2"], params["b2"]
    Cout = w1.shape[0]
    use_proj = (stride != 1)
    if not use_proj:
        assert Cin == Cout, "identity shortcut requires Cin == Cout (as in the PyTorch module)"

    s = stride
    H1 = (H - 1) // s + 1
    W1 = (W - 1) // s + 1
    M = N * H1 * W1
    pr = 2 // s                      # extra rows/cols each phase needs beyond H1/W1
    Hs, Ws = H1 + pr, W1 + pr

    vmem_limit = _vmem_budget_bytes()
    if batch_tile is None:
        fitting = [d for d in range(1, N + 1) if N % d == 0
                   and _vmem_estimate(d, H1, W1, Hs, Ws, Cin, Cout, s) <= vmem_limit // 2]
        pipelined = [d for d in fitting if N // d >= 2]
        batch_tile = max(pipelined) if pipelined else (max(fitting) if fitting else 1)
    nb = batch_tile
    assert N % nb == 0
    nt = N // nb
    cp = _compiler_params(vmem_limit)

    # ---- NHWC bf16 padded input + phase decomposition (all in-kernel reads contiguous) ----
    eh = max(0, s * Hs - (H + 2))
    ew = max(0, s * Ws - (W + 2))
    x_nhwc = jnp.transpose(x, (0, 2, 3, 1)).astype(jnp.bfloat16)
    xpad = jnp.pad(x_nhwc, ((0, 0), (1, 1 + eh), (1, 1 + ew), (0, 0)))
    xph = jnp.stack([xpad[:, a:a + s * Hs:s, b:b + s * Ws:s, :]
                     for a in range(s) for b in range(s)], axis=1)    # (N, s*s, Hs, Ws, Cin)

    # weight layouts: rows ordered (kh, kw, cin) to match the in-kernel tap order
    w1m = jnp.transpose(w1, (2, 3, 1, 0)).reshape(9 * Cin, Cout).astype(jnp.bfloat16)
    w2m = jnp.transpose(w2, (2, 3, 1, 0)).reshape(9 * Cout, Cout).astype(jnp.bfloat16)

    # ---------------- pass 1: conv1 + bn1 stats ----------------
    y1, s1 = pl.pallas_call(
        functools.partial(_conv1_stats_kernel, nb=nb, H1=H1, W1=W1,
                          Cin=Cin, Cout=Cout, stride=s),
        grid=(nt,),
        in_specs=[
            pl.BlockSpec((nb, s * s, Hs, Ws, Cin), lambda n: (n, 0, 0, 0, 0)),
            pl.BlockSpec((9 * Cin, Cout), lambda n: (0, 0)),          # VMEM-resident weight
        ],
        out_specs=[
            pl.BlockSpec((nb, H1, W1, Cout), lambda n: (n, 0, 0, 0)),
            pl.BlockSpec((1, 2, Cout), lambda n: (n, 0, 0)),
        ],
        out_shape=[
            jax.ShapeDtypeStruct((N, H1, W1, Cout), jnp.bfloat16),
            jax.ShapeDtypeStruct((nt, 2, Cout), jnp.float32),
        ],
        compiler_params=cp,
    )(xph, w1m)

    def _fold_bn(stats, g, b):
        mean = stats[0] / M
        var = jnp.maximum(stats[1] / M - mean * mean, 0.0)   # biased (training-mode) var
        a = g * jax.lax.rsqrt(var + EPS)
        c = b - mean * a
        return (a.reshape(1, Cout).astype(jnp.float32),
                c.reshape(1, Cout).astype(jnp.float32))

    a1, c1 = _fold_bn(jnp.sum(s1, axis=0), g1, b1)

    # ---------------- pass 2: bn1 + relu + conv2 + bn2 stats ----------------
    y2, s2 = pl.pallas_call(
        functools.partial(_bn1_relu_conv2_stats_kernel, nb=nb, H1=H1, W1=W1, Cout=Cout),
        grid=(nt,),
        in_specs=[
            pl.BlockSpec((nb, H1, W1, Cout), lambda n: (n, 0, 0, 0)),
            pl.BlockSpec((1, Cout), lambda n: (0, 0)),
            pl.BlockSpec((1, Cout), lambda n: (0, 0)),
            pl.BlockSpec((9 * Cout, Cout), lambda n: (0, 0)),         # VMEM-resident weight
        ],
        out_specs=[
            pl.BlockSpec((nb, H1, W1, Cout), lambda n: (n, 0, 0, 0)),
            pl.BlockSpec((1, 2, Cout), lambda n: (n, 0, 0)),
        ],
        out_shape=[
            jax.ShapeDtypeStruct((N, H1, W1, Cout), jnp.bfloat16),
            jax.ShapeDtypeStruct((nt, 2, Cout), jnp.float32),
        ],
        scratch_shapes=[pltpu.VMEM((nb, H1 + 2, W1 + 2, Cout), jnp.bfloat16)],
        compiler_params=cp,
    )(y1, a1, c1, w2m)

    a2, c2 = _fold_bn(jnp.sum(s2, axis=0), g2, b2)

    # ---------------- pass 3: bn2 + shortcut + relu ----------------
    # bf16 shortcut sliced from the already-materialized bf16 padded input
    # (halves the largest pass-3 input stream vs a separate f32 NHWC copy).
    xsc = xpad[:, 1:1 + s * H1:s, 1:1 + s * W1:s, :]                  # (N, H1, W1, Cin) bf16

    in_specs3 = [
        pl.BlockSpec((nb, H1, W1, Cout), lambda n: (n, 0, 0, 0)),
        pl.BlockSpec((1, Cout), lambda n: (0, 0)),
        pl.BlockSpec((1, Cout), lambda n: (0, 0)),
        pl.BlockSpec((nb, H1, W1, Cin), lambda n: (n, 0, 0, 0)),
    ]
    args3 = [y2, a2, c2, xsc]
    if use_proj:
        wscm = jnp.transpose(params["wsc"].reshape(Cout, Cin), (1, 0)).astype(jnp.bfloat16)
        in_specs3.append(pl.BlockSpec((Cin, Cout), lambda n: (0, 0)))
        args3.append(wscm)
    # else: the dead 1x1-projection weight is dropped entirely (no resident DMA).

    out = pl.pallas_call(
        functools.partial(_bn2_add_relu_kernel, nb=nb, H1=H1, W1=W1,
                          Cin=Cin, Cout=Cout, use_proj=use_proj),
        grid=(nt,),
        in_specs=in_specs3,
        out_specs=pl.BlockSpec((nb, H1, W1, Cout), lambda n: (n, 0, 0, 0)),
        out_shape=jax.ShapeDtypeStruct((N, H1, W1, Cout), jnp.float32),
        compiler_params=cp,
    )(*args3)

    return jnp.transpose(out, (0, 3, 1, 2))


# -------------------- pure-JAX reference (for correctness check) --------------------
def block_reference(x, params, stride):
    w1, g1, b1 = params["w1"], params["g1"], params["b1"]
    w2, g2, b2 = params["w2"], params["g2"], params["b2"]
    wsc = params["wsc"]

    def conv(t, w, s, pad):
        return jax.lax.conv_general_dilated(
            t, w, (s, s), [(pad, pad), (pad, pad)],
            dimension_numbers=("NCHW", "OIHW", "NCHW"))

    def bn(t, g, b):
        m = jnp.mean(t, axis=(0, 2, 3), keepdims=True)
        v = jnp.mean((t - m) ** 2, axis=(0, 2, 3), keepdims=True)
        return (t - m) * jax.lax.rsqrt(v + EPS) * g.reshape(1, -1, 1, 1) + b.reshape(1, -1, 1, 1)

    y = jax.nn.relu(bn(conv(x, w1, stride, 1), g1, b1))
    y = bn(conv(y, w2, 1, 1), g2, b2)
    sc = x if stride == 1 else conv(x, wsc, stride, 0)
    return jax.nn.relu(y + sc)


if __name__ == "__main__":
    key = jax.random.PRNGKey(0)

    def make_params(k, cin, cout):
        ks = jax.random.split(k, 7)
        return {
            "w1": 0.1 * jax.random.normal(ks[0], (cout, cin, 3, 3), jnp.float32),
            "g1": 1.0 + 0.1 * jax.random.normal(ks[1], (cout,), jnp.float32),
            "b1": 0.1 * jax.random.normal(ks[2], (cout,), jnp.float32),
            "w2": 0.1 * jax.random.normal(ks[3], (cout, cout, 3, 3), jnp.float32),
            "g2": 1.0 + 0.1 * jax.random.normal(ks[4], (cout,), jnp.float32),
            "b2": 0.1 * jax.random.normal(ks[5], (cout,), jnp.float32),
            "wsc": 0.1 * jax.random.normal(ks[6], (cout, cin, 1, 1), jnp.float32),
        }

    k1, k2, kx1, kx2 = jax.random.split(key, 4)

    # case 1: stride-2 downsampling block (1x1 projection shortcut)
    N, Cin, Cout, H, W = 2, 4, 8, 16, 16
    params = make_params(k1, Cin, Cout)
    x = jax.random.normal(kx1, (N, Cin, H, W), jnp.float32)
    out = jax.block_until_ready(block_forward(x, params, stride=2))
    ref = jax.block_until_ready(block_reference(x, params, 2))
    assert out.shape == ref.shape, (out.shape, ref.shape)
    # bf16 matmul operands / bf16 shortcut (f32 accumulation) -> loose tolerance
    assert jnp.allclose(out, ref, atol=3e-2, rtol=3e-2), float(jnp.max(jnp.abs(out - ref)))

    # case 2: stride-1 block (identity shortcut)
    params1 = make_params(k2, Cout, Cout)
    x1 = jax.random.normal(kx2, (N, Cout, H, W), jnp.float32)
    out1 = jax.block_until_ready(block_forward(x1, params1, stride=1))
    ref1 = jax.block_until_ready(block_reference(x1, params1, 1))
    assert out1.shape == ref1.shape, (out1.shape, ref1.shape)
    assert jnp.allclose(out1, ref1, atol=3e-2, rtol=3e-2), float(jnp.max(jnp.abs(out1 - ref1)))

    print("KERNEL_OK")
</pallas_src>

<mosaic_0001>
module attributes {stable_mosaic.version = 11 : i64} {
  func.func @_conv1_stats_kernel(%arg0: i32, %arg1: memref<1x4x9x9x4xbf16, #tpu.memory_space<vmem>>, %arg2: memref<36x8xbf16, #tpu.memory_space<vmem>>, %arg3: memref<1x8x8x8xbf16, #tpu.memory_space<vmem>>, %arg4: memref<1x2x8xf32, #tpu.memory_space<vmem>>) attributes {dimension_semantics = [#tpu.dimension_semantics<parallel>], iteration_bounds = array<i64: 2>, scalar_prefetch = 0 : i64, scratch_operands = 0 : i64, tpu.core_type = #tpu.core_type<tc>, window_params = [{transform_indices = @transform_0, window_bounds = array<i64: 1, 4, 9, 9, 4>}, {pipeline_mode = #tpu.pipeline_mode<synchronous>, transform_indices = @transform_1, window_bounds = array<i64: 36, 8>}, {transform_indices = @transform_2, window_bounds = array<i64: 1, 8, 8, 8>}, {transform_indices = @transform_3, window_bounds = array<i64: 1, 2, 8>}]} {
    %c0 = arith.constant 0 : index
    %c0_0 = arith.constant 0 : index
    %c0_1 = arith.constant 0 : index
    %c0_2 = arith.constant 0 : index
    %c0_3 = arith.constant 0 : index
    %0 = vector.load %arg1[%c0, %c0_0, %c0_1, %c0_2, %c0_3] : memref<1x4x9x9x4xbf16, #tpu.memory_space<vmem>>, vector<1x1x8x8x4xbf16>
    %1 = vector.shape_cast %0 : vector<1x1x8x8x4xbf16> to vector<1x8x8x4xbf16>
    %2 = vector.shape_cast %1 : vector<1x8x8x4xbf16> to vector<64x4xbf16>
    %c0_4 = arith.constant 0 : index
    %c0_5 = arith.constant 0 : index
    %3 = vector.load %arg2[%c0_4, %c0_5] : memref<36x8xbf16, #tpu.memory_space<vmem>>, vector<4x8xbf16>
    %cst = arith.constant dense<0.000000e+00> : vector<64x8xf32>
    %4 = tpu.matmul %2, %3, %cst {dimension_numbers = #tpu.dot_dimension_numbers<[1], [0], [0], [1], [0, 0, 1, 1], [], []>} : vector<64x4xbf16>, vector<4x8xbf16>, vector<64x8xf32> -> vector<64x8xf32>
    %c0_6 = arith.constant 0 : index
    %c1 = arith.constant 1 : index
    %c0_7 = arith.constant 0 : index
    %c0_8 = arith.constant 0 : index
    %c0_9 = arith.constant 0 : index
    %5 = vector.load %arg1[%c0_6, %c1, %c0_7, %c0_8, %c0_9] : memref<1x4x9x9x4xbf16, #tpu.memory_space<vmem>>, vector<1x1x8x8x4xbf16>
    %6 = vector.shape_cast %5 : vector<1x1x8x8x4xbf16> to vector<1x8x8x4xbf16>
    %7 = vector.shape_cast %6 : vector<1x8x8x4xbf16> to vector<64x4xbf16>
    %c4 = arith.constant 4 : index
    %c0_10 = arith.constant 0 : index
    %8 = vector.load %arg2[%c4, %c0_10] : memref<36x8xbf16, #tpu.memory_space<vmem>>, vector<4x8xbf16>
    %cst_11 = arith.constant dense<0.000000e+00> : vector<64x8xf32>
    %9 = tpu.matmul %7, %8, %cst_11 {dimension_numbers = #tpu.dot_dimension_numbers<[1], [0], [0], [1], [0, 0, 1, 1], [], []>} : vector<64x4xbf16>, vector<4x8xbf16>, vector<64x8xf32> -> vector<64x8xf32>
    %10 = arith.addf %4, %9 : vector<64x8xf32>
    %c0_12 = arith.constant 0 : index
    %c0_13 = arith.constant 0 : index
    %c0_14 = arith.constant 0 : index
    %c1_15 = arith.constant 1 : index
    %c0_16 = arith.constant 0 : index
    %11 = vector.load %arg1[%c0_12, %c0_13, %c0_14, %c1_15, %c0_16] : memref<1x4x9x9x4xbf16, #tpu.memory_space<vmem>>, vector<1x1x8x8x4xbf16>
    %12 = vector.shape_cast %11 : vector<1x1x8x8x4xbf16> to vector<1x8x8x4xbf16>
    %13 = vector.shape_cast %12 : vector<1x8x8x4xbf16> to vector<64x4xbf16>
    %c8 = arith.constant 8 : index
    %c0_17 = arith.constant 0 : index
    %14 = vector.load %arg2[%c8, %c0_17] : memref<36x8xbf16, #tpu.memory_space<vmem>>, vector<4x8xbf16>
    %cst_18 = arith.constant dense<0.000000e+00> : vector<64x8xf32>
    %15 = tpu.matmul %13, %14, %cst_18 {dimension_numbers = #tpu.dot_dimension_numbers<[1], [0], [0], [1], [0, 0, 1, 1], [], []>} : vector<64x4xbf16>, vector<4x8xbf16>, vector<64x8xf32> -> vector<64x8xf32>
    %16 = arith.addf %10, %15 : vector<64x8xf32>
    %c0_19 = arith.constant 0 : index
    %c2 = arith.constant 2 : index
    %c0_20 = arith.constant 0 : index
    %c0_21 = arith.constant 0 : index
    %c0_22 = arith.constant 0 : index
    %17 = vector.load %arg1[%c0_19, %c2, %c0_20, %c0_21, %c0_22] : memref<1x4x9x9x4xbf16, #tpu.memory_space<vmem>>, vector<1x1x8x8x4xbf16>
    %18 = vector.shape_cast %17 : vector<1x1x8x8x4xbf16> to vector<1x8x8x4xbf16>
    %19 = vector.shape_cast %18 : vector<1x8x8x4xbf16> to vector<64x4xbf16>
    %c12 = arith.constant 12 : index
    %c0_23 = arith.constant 0 : index
    %20 = vector.load %arg2[%c12, %c0_23] : memref<36x8xbf16, #tpu.memory_space<vmem>>, vector<4x8xbf16>
    %cst_24 = arith.constant dense<0.000000e+00> : vector<64x8xf32>
    %21 = tpu.matmul %19, %20, %cst_24 {dimension_numbers = #tpu.dot_dimension_numbers<[1], [0], [0], [1], [0, 0, 1, 1], [], []>} : vector<64x4xbf16>, vector<4x8xbf16>, vector<64x8xf32> -> vector<64x8xf32>
    %22 = arith.addf %16, %21 : vector<64x8xf32>
    %c0_25 = arith.constant 0 : index
    %c3 = arith.constant 3 : index
    %c0_26 = arith.constant 0 : index
    %c0_27 = arith.constant 0 : index
    %c0_28 = arith.constant 0 : index
    %23 = vector.load %arg1[%c0_25, %c3, %c0_26, %c0_27, %c0_28] : memref<1x4x9x9x4xbf16, #tpu.memory_space<vmem>>, vector<1x1x8x8x4xbf16>
    %24 = vector.shape_cast %23 : vector<1x1x8x8x4xbf16> to vector<1x8x8x4xbf16>
    %25 = vector.shape_cast %24 : vector<1x8x8x4xbf16> to vector<64x4xbf16>
    %c16 = arith.constant 16 : index
    %c0_29 = arith.constant 0 : index
    %26 = vector.load %arg2[%c16, %c0_29] : memref<36x8xbf16, #tpu.memory_space<vmem>>, vector<4x8xbf16>
    %cst_30 = arith.constant dense<0.000000e+00> : vector<64x8xf32>
    %27 = tpu.matmul %25, %26, %cst_30 {dimension_numbers = #tpu.dot_dimension_numbers<[1], [0], [0], [1], [0, 0, 1, 1], [], []>} : vector<64x4xbf16>, vector<4x8xbf16>, vector<64x8xf32> -> vector<64x8xf32>
    %28 = arith.addf %22, %27 : vector<64x8xf32>
    %c0_31 = arith.constant 0 : index
    %c2_32 = arith.constant 2 : index
    %c0_33 = arith.constant 0 : index
    %c1_34 = arith.constant 1 : index
    %c0_35 = arith.constant 0 : index
    %29 = vector.load %arg1[%c0_31, %c2_32, %c0_33, %c1_34, %c0_35] : memref<1x4x9x9x4xbf16, #tpu.memory_space<vmem>>, vector<1x1x8x8x4xbf16>
    %30 = vector.shape_cast %29 : vector<1x1x8x8x4xbf16> to vector<1x8x8x4xbf16>
    %31 = vector.shape_cast %30 : vector<1x8x8x4xbf16> to vector<64x4xbf16>
    %c20 = arith.constant 20 : index
    %c0_36 = arith.constant 0 : index
    %32 = vector.load %arg2[%c20, %c0_36] : memref<36x8xbf16, #tpu.memory_space<vmem>>, vector<4x8xbf16>
    %cst_37 = arith.constant dense<0.000000e+00> : vector<64x8xf32>
    %33 = tpu.matmul %31, %32, %cst_37 {dimension_numbers = #tpu.dot_dimension_numbers<[1], [0], [0], [1], [0, 0, 1, 1], [], []>} : vector<64x4xbf16>, vector<4x8xbf16>, vector<64x8xf32> -> vector<64x8xf32>
    %34 = arith.addf %28, %33 : vector<64x8xf32>
    %c0_38 = arith.constant 0 : index
    %c0_39 = arith.constant 0 : index
    %c1_40 = arith.constant 1 : index
    %c0_41 = arith.constant 0 : index
    %c0_42 = arith.constant 0 : index
    %35 = vector.load %arg1[%c0_38, %c0_39, %c1_40, %c0_41, %c0_42] : memref<1x4x9x9x4xbf16, #tpu.memory_space<vmem>>, vector<1x1x8x8x4xbf16>
    %36 = vector.shape_cast %35 : vector<1x1x8x8x4xbf16> to vector<1x8x8x4xbf16>
    %37 = vector.shape_cast %36 : vector<1x8x8x4xbf16> to vector<64x4xbf16>
    %c24 = arith.constant 24 : index
    %c0_43 = arith.constant 0 : index
    %38 = vector.load %arg2[%c24, %c0_43] : memref<36x8xbf16, #tpu.memory_space<vmem>>, vector<4x8xbf16>
    %cst_44 = arith.constant dense<0.000000e+00> : vector<64x8xf32>
    %39 = tpu.matmul %37, %38, %cst_44 {dimension_numbers = #tpu.dot_dimension_numbers<[1], [0], [0], [1], [0, 0, 1, 1], [], []>} : vector<64x4xbf16>, vector<4x8xbf16>, vector<64x8xf32> -> vector<64x8xf32>
    %40 = arith.addf %34, %39 : vector<64x8xf32>
    %c0_45 = arith.constant 0 : index
    %c1_46 = arith.constant 1 : index
    %c1_47 = arith.constant 1 : index
    %c0_48 = arith.constant 0 : index
    %c0_49 = arith.constant 0 : index
    %41 = vector.load %arg1[%c0_45, %c1_46, %c1_47, %c0_48, %c0_49] : memref<1x4x9x9x4xbf16, #tpu.memory_space<vmem>>, vector<1x1x8x8x4xbf16>
    %42 = vector.shape_cast %41 : vector<1x1x8x8x4xbf16> to vector<1x8x8x4xbf16>
    %43 = vector.shape_cast %42 : vector<1x8x8x4xbf16> to vector<64x4xbf16>
    %c28 = arith.constant 28 : index
    %c0_50 = arith.constant 0 : index
    %44 = vector.load %arg2[%c28, %c0_50] : memref<36x8xbf16, #tpu.memory_space<vmem>>, vector<4x8xbf16>
    %cst_51 = arith.constant dense<0.000000e+00> : vector<64x8xf32>
    %45 = tpu.matmul %43, %44, %cst_51 {dimension_numbers = #tpu.dot_dimension_numbers<[1], [0], [0], [1], [0, 0, 1, 1], [], []>} : vector<64x4xbf16>, vector<4x8xbf16>, vector<64x8xf32> -> vector<64x8xf32>
    %46 = arith.addf %40, %45 : vector<64x8xf32>
    %c0_52 = arith.constant 0 : index
    %c0_53 = arith.constant 0 : index
    %c1_54 = arith.constant 1 : index
    %c1_55 = arith.constant 1 : index
    %c0_56 = arith.constant 0 : index
    %47 = vector.load %arg1[%c0_52, %c0_53, %c1_54, %c1_55, %c0_56] : memref<1x4x9x9x4xbf16, #tpu.memory_space<vmem>>, vector<1x1x8x8x4xbf16>
    %48 = vector.shape_cast %47 : vector<1x1x8x8x4xbf16> to vector<1x8x8x4xbf16>
    %49 = vector.shape_cast %48 : vector<1x8x8x4xbf16> to vector<64x4xbf16>
    %c32 = arith.constant 32 : index
    %c0_57 = arith.constant 0 : index
    %50 = vector.load %arg2[%c32, %c0_57] : memref<36x8xbf16, #tpu.memory_space<vmem>>, vector<4x8xbf16>
    %cst_58 = arith.constant dense<0.000000e+00> : vector<64x8xf32>
    %51 = tpu.matmul %49, %50, %cst_58 {dimension_numbers = #tpu.dot_dimension_numbers<[1], [0], [0], [1], [0, 0, 1, 1], [], []>} : vector<64x4xbf16>, vector<4x8xbf16>, vector<64x8xf32> -> vector<64x8xf32>
    %52 = arith.addf %46, %51 : vector<64x8xf32>
    %cst_59 = arith.constant dense<0.000000e+00> : vector<8xf32>
    %53 = vector.multi_reduction <add>, %52, %cst_59 [0] : vector<64x8xf32> to vector<8xf32>
    %54 = vector.shape_cast %53 : vector<8xf32> to vector<1x8xf32>
    %55 = arith.mulf %52, %52 : vector<64x8xf32>
    %cst_60 = arith.constant dense<0.000000e+00> : vector<8xf32>
    %56 = vector.multi_reduction <add>, %55, %cst_60 [0] : vector<64x8xf32> to vector<8xf32>
    %57 = vector.shape_cast %56 : vector<8xf32> to vector<1x8xf32>
    %58 = tpu.concatenate %54, %57 in 0 : vector<1x8xf32>, vector<1x8xf32> -> vector<2x8xf32>
    %59 = vector.shape_cast %58 : vector<2x8xf32> to vector<1x2x8xf32>
    %c0_61 = arith.constant 0 : index
    %c0_62 = arith.constant 0 : index
    %c0_63 = arith.constant 0 : index
    %60 = vector.load %arg4[%c0_61, %c0_62, %c0_63] : memref<1x2x8xf32, #tpu.memory_space<vmem>>, vector<1x2x8xf32>
    tpu.vector_store %arg4[%c0_61, %c0_62, %c0_63], %59 {strides = array<i32>} : memref<1x2x8xf32, #tpu.memory_space<vmem>>, vector<1x2x8xf32>,
    %61 = vector.shape_cast %52 : vector<64x8xf32> to vector<1x8x8x8xf32>
    %62 = arith.truncf %61 : vector<1x8x8x8xf32> to vector<1x8x8x8xbf16>
    %c0_64 = arith.constant 0 : index
    %c0_65 = arith.constant 0 : index
    %c0_66 = arith.constant 0 : index
    %c0_67 = arith.constant 0 : index
    %63 = vector.load %arg3[%c0_64, %c0_65, %c0_66, %c0_67] : memref<1x8x8x8xbf16, #tpu.memory_space<vmem>>, vector<1x8x8x8xbf16>
    tpu.vector_store %arg3[%c0_64, %c0_65, %c0_66, %c0_67], %62 {strides = array<i32>} : memref<1x8x8x8xbf16, #tpu.memory_space<vmem>>, vector<1x8x8x8xbf16>,
    return
  }
  func.func @transform_0(%arg0: i32) -> (i32, i32, i32, i32, i32) {
    %c0_i32 = arith.constant 0 : i32
    %c0_i32_0 = arith.constant 0 : i32
    %c0_i32_1 = arith.constant 0 : i32
    %c0_i32_2 = arith.constant 0 : i32
    %c0_i32_3 = arith.constant 0 : i32
    return %arg0, %c0_i32, %c0_i32_0, %c0_i32_1, %c0_i32_2 : i32, i32, i32, i32, i32
  }
  func.func @transform_1(%arg0: i32) -> (i32, i32) {
    %c0_i32 = arith.constant 0 : i32
    %c0_i32_0 = arith.constant 0 : i32
    %c0_i32_1 = arith.constant 0 : i32
    return %c0_i32, %c0_i32_0 : i32, i32
  }
  func.func @transform_2(%arg0: i32) -> (i32, i32, i32, i32) {
    %c0_i32 = arith.constant 0 : i32
    %c0_i32_0 = arith.constant 0 : i32
    %c0_i32_1 = arith.constant 0 : i32
    %c0_i32_2 = arith.constant 0 : i32
    return %arg0, %c0_i32, %c0_i32_0, %c0_i32_1 : i32, i32, i32, i32
  }
  func.func @transform_3(%arg0: i32) -> (i32, i32, i32) {
    %c0_i32 = arith.constant 0 : i32
    %c0_i32_0 = arith.constant 0 : i32
    %c0_i32_1 = arith.constant 0 : i32
    return %arg0, %c0_i32, %c0_i32_0 : i32, i32, i32
  }
}

</mosaic_0001>

<bundles_post_ra>
// kernel: tpu_custom_call.1
= control target key start
LH: loop header
LB: loop body
LE: loop exit
PB: predicated region body
PF: predicated region fallthrough
CT: control target
= control target key end

     0   :  { %9 = vsyncpa [#allocation3], 0  ;;  %s2675_s0 = inlined_call_operand.vmem [shape: bf16[2,4,9,9,4], index: 0, kind: input, shape index: {}]   ;;  %s2676_s1 = inlined_call_operand.vmem [shape: bf16[36,8], index: 1, kind: input, shape index: {}]   ;;  %s2677_s2 = inlined_call_operand.hbm [shape: bf16[2,8,8,8], index: 2, kind: output, shape index: {0}]   ;;  %s2678_s3 = inlined_call_operand.hbm [shape: f32[2,2,8], index: 3, kind: output, shape index: {1}]  }
   0x1   :  { %11 = vsyncpa [#allocation3 + $0x1], 0 }
   0x2   :  { %12 = vsyncpa [#allocation5], 0 }
   0x3   :  { %14 = vsyncpa [#allocation5 + $0x1], 0  ;;  %s2279_s12 = smov 0   ;;  %s2281_s13 = smov 0  }
   0x4   :  { %s2283_s14 = smov 0   ;;  %s2285_s15 = smov 0  }
   0x5 LB: > { %s2300_s16 = sadd.s32 4294967295, %s2253_s15   ;;  %s1778_s17 = sadd.s32 4294967294, %s2253_s15   ;;  %s2253_s15 = sphi %s2285_s15, %s2686_s15   ;;  %s2249_s14 = sphi %s2283_s14, %s2685_s14   ;;  %s2245_s13 = sphi %s2281_s13, %s2684_s13   ;;  %s2241_s12 = sphi %s2279_s12, %s2683_s12  }
   0x6   : > { %s2304_s18 = sadd.s32 1, %s2253_s15   ;;  %s74_s19 = sadd.s32 1, %s2249_s14 }
   0x7   : > { %s71_s20 = ssub.s32 %s2253_s15, %s2304_s18  ;;  %p84_p0 = scmp.ne.s32.totalorder %s2249_s14, %s2245_s13 }
   0x8   : > { %p72_p1 = scmp.eq.s32.totalorder %s71_s20, 0  ;;  %p85_p2 = scmp.eq.s32.totalorder %s2300_s16, 1 }
   0x9   : > { %p90_p3 = scmp.ne.s32.totalorder %s2245_s13, %s2241_s12  ;;  %p91_p4 = scmp.eq.s32.totalorder %s1778_s17, 1 }
   0xa   : > { %s2315_s21 = scalar_select %p72_p1, %s2249_s14, %s74_s19  }
   0xb   : > { %p2317_p5 = por %p85_p2, %p84_p0  ;;  %p2321_p6 = por %p91_p4, %p90_p3 }
   0xc   : > { %p1781_p7 = scmp.ge.s32.totalorder %s2253_s15, 1  ;;  %p146_p8 = scmp.lt.s32.totalorder %s2253_s15, 3 }
   0xe   : > { %p147_p9 = pnand %p1781_p7, %p146_p8 }
   0xf   : > { %p175_p10 = scmp.lt.s32.totalorder (!%p147_p9), %s2300_s16, 1  ;;  %s2562_s29 = sand.u32 (!%p147_p9), 1, %s2245_s13  }
  0x10   : > { %150 = sbr.rel (%p147_p9) target bundleno = 350 (0x15e), region = 28  ;;  %s1782_s30 = sshll.u32 (!%p147_p9), %s2562_s29, 5 }
  0x11   : > { %s2568_s4 = scalar_lea.vmem (!%p147_p9), [#allocation2], %s1782_s30  ;;  %s1940_s5 = sshll.u32 (!%p147_p9), %s2300_s16, 9 }
  0x12   : > { %s1653_s10 = scalar_lea.sflag (!%p147_p9), [#allocation3], %s2562_s29  ;;  %s2255_s17 = smov (!%p147_p9), [#allocation2]  }
  0x13   : > { %s2167_s19 = sshll.u32 (!%p147_p9), %s2255_s17, 4  ;;  %s2168_s19 = int_to_ptr.vmem [resolvable:$false] %s2167_s19 }
  0x14   : > { %s2169_s20 = scalar_lea.vmem (!%p147_p9), %s2168_s19, 1024 }
  0x15   : > { %v2135_v0 = vld [vmem:[%s2676_s1] ss:$0 sps:$4 sm:$0xcc]   ;;  %vm237_vm0 = vcmask 1041408   ;;  %s176_s28 = scalar_select %p175_p10, %s2300_s16, 1  ;;  %vm224_vm1 = vcmask 31744  }
  0x16   : > { %v223_v1 = vrot.slane %v2135_v0, 2  ;;  %v189_v2 = vld [vmem:[%s2676_s1] sm:$0x3]  ;;  %v537_v3 = vld [vmem:[%s2676_s1 + $0x4] sm:$0x3]  ;;  %vm1643_vm5 = vcmask 60416  }
  0x17   : > { %v2141_v4 = vld [vmem:[%s2676_s1 + $0x4] ss:$0 sps:$4 sm:$0xcc]   ;;  %s2088_s6 = smul.u32 288, %s176_s28  ;;  %v339_v6 = vsel %vm237_vm0, %v189_v2, 0  ;;  %v563_v7 = vsel %vm237_vm0, %v537_v3, 0 }
  0x18   : > { %2079 = vmatprep.subr.msk.bf16.mxu1 %vm237_vm0, %v223_v1  ;;  %2078 = vmatprep.subr.msk.bf16.mxu0 %vm237_vm0, %v223_v1  ;;  %v239_v5 = vsel %vm237_vm0, %v223_v1, 0  ;;  %v671_v8 = vrot.slane %v2141_v4, 2  ;;  %v769_v10 = vld [vmem:[%s2676_s1 + $0x8] sm:$0x3]  ;;  %vm422_vm2 = vsmask.f32 3328 }
  0x19   : > { %2077 = vmatpush3.bf16.msra.mxu1 %v239_v5  ;;  %1987 = vmatpush3.bf16.msra.mxu0 %v239_v5  ;;  %s2349_s9 = scalar_lea.vmem %s2675_s0, %s2088_s6  ;;  %vm423_vm3 = vsmask.f32 7440  ;;  %v2367_v16 = vsel %vm237_vm0, %v769_v10, 0  ;;  %vm1580_vm6 = vcmask 64512   ;;  %s1671_s6 = sshll.u32 %s2568_s4, 4  ;;  %s2599_s6 = int_to_ptr.vmem [resolvable:$true] %s1671_s6 }
  0x1a   : > { %2080 = vmatprep.subr.msk.bf16.mxu1 %vm237_vm0, %v189_v2  ;;  %2081 = vmatprep.subr.msk.bf16.mxu0 %vm237_vm0, %v537_v3  ;;  %v2136_v9 = vld [vmem:[%s2349_s9 + $0x48] ss:$8 sps:$4 sm:$0xff]   ;;  %v2138_v12 = vld [vmem:[%s2349_s9 + $0x58] ss:$8 sps:$4 sm:$0xff]   ;;  %v685_v15 = vsel %vm237_vm0, %v671_v8, 0  ;;  %vm2383_vm4 = vmor %vm422_vm2, %vm423_vm3  ;;  %s2163_s11 = scalar_lea.vmem %s2599_s6, 512  ;;  %p2170_p0 = scmp.lt.s32.totalorder %s2599_s6, %s2168_s19 }
  0x1b   : > { %v2137_v11 = vld [vmem:[%s2349_s9 + $0x68] ss:$8 sps:$4 sm:$0xff]   ;;  %1988 = vmatprep.mubr.msk.bf16.mxu0 %vm224_vm1, %v2136_v9  ;;  %v2139_v13 = vld [vmem:[%s2349_s9 + $0x78] ss:$8 sps:$4 sm:$0xff]   ;;  %v407_v18 = vld [vmem:[%s2349_s9 + $0x4] sm:$0x1]  ;;  %p2164_p11 = scmp.ne.s32.totalorder %s2599_s6, %s2163_s11  ;;  %p2171_p1 = scmp.lt.s32.totalorder %s2169_s20, %s2163_s11 }
  0x1c   : > { %1992 = vmatprep.mubr.msk.bf16.mxu1 %vm224_vm1, %v2137_v11  ;;  %1989 = vmatmul.mubr.msk.bf16.vlgmr.msra.gmra.mxu0 %vm224_vm1, %v2138_v12  ;;  %v2140_v14 = vld [vmem:[%s2349_s9] ss:$8 sps:$4 sm:$0xff]   ;;  %v2142_v20 = vld [vmem:[%s2349_s9 + $0x10] ss:$8 sps:$4 sm:$0xff]   ;;  %v409_v21 = vld [vmem:[%s2349_s9 + $0xc] sm:$0x1] }
  0x1d   : > { %1993 = vmatmul.mubr.msk.bf16.vlgmr.msra.gmra.mxu1 %vm224_vm1, %v2139_v13  ;;  %2007 = vmatpush3.bf16.msra.mxu0 %v563_v7  ;;  %v406_v17 = vld [vmem:[%s2349_s9] sm:$0xf]  ;;  %v408_v19 = vld [vmem:[%s2349_s9 + $0x8] sm:$0xf]  ;;  %v435_v24 = vshll.u32 %v407_v18, 16  ;;  %v449_v27 = vshll.u32 %v409_v21, 16  ;;  %p2165_p12 = pnand %p2164_p11, %p2317_p5  ;;  %p2172_p2 = por %p2171_p1, %p2170_p0 }
  0x1e   : > { %1997 = vmatpush3.bf16.msra.mxu1 %v339_v6  ;;  %1998 = vmatprep.mubr.msk.bf16.mxu1 %vm224_vm1, %v2140_v14  ;;  %v426_v22 = vshrl.u32 %v406_v17, 16  ;;  %v429_v23 = vshll.u32 %v406_v17, 16  ;;  %v440_v25 = vshrl.u32 %v408_v19, 16  ;;  %v443_v26 = vshll.u32 %v408_v19, 16  ;;  %v410_v28 = vld [vmem:[%s2349_s9 + $0x10] sm:$0xf] }
  0x1f   : > { %2082 = vmatprep.subr.msk.bf16.mxu1 %vm237_vm0, %v671_v8  ;;  %2083 = vmatprep.subr.msk.bf16.mxu0 %vm237_vm0, %v769_v10  ;;  %v411_v29 = vld [vmem:[%s2349_s9 + $0x14] sm:$0x1]  ;;  %v437_v32 = vrot.slane %v435_v24, 5  ;;  %v412_v34 = vld [vmem:[%s2349_s9 + $0x18] sm:$0xf]  ;;  %v451_v36 = vrot.slane %v449_v27, 5  ;;  %p2166_p13 = pneg %p2165_p12 }
  0x20   : > { %v428_v30 = vrot.slane %v426_v22, 4  ;;  %v431_v31 = vrot.slane %v429_v23, 5  ;;  %v442_v33 = vrot.slane %v440_v25, 4  ;;  %v445_v35 = vrot.slane %v443_v26, 5  ;;  %v413_v37 = vld [vmem:[%s2349_s9 + $0x1c] sm:$0x1] }
  0x21   : > { %v454_v38 = vshrl.u32 %v410_v28, 16  ;;  %v457_v39 = vshll.u32 %v410_v28, 16  ;;  %v463_v41 = vshll.u32 %v411_v29, 16  ;;  %v468_v42 = vshrl.u32 %v412_v34, 16  ;;  %v2143_v53 = vld [vmem:[%s2349_s9 + $0x20] ss:$8 sps:$4 sm:$0xff]   ;;  %p2173_p3 = pnand %p2172_p2, %p2166_p13 }
  0x22   : > { %v432_v40 = vor.u32 %v431_v31, %v428_v30  ;;  %v471_v43 = vshll.u32 %v412_v34, 16  ;;  %v446_v45 = vor.u32 %v445_v35, %v442_v33  ;;  %v477_v48 = vshll.u32 %v413_v37, 16  ;;  %v2144_v59 = vld [vmem:[%s2349_s9 + $0x30] ss:$8 sps:$4 sm:$0xff]   ;;  %v414_v60 = vld [vmem:[%s2349_s9 + $0x20] sm:$0xf] }
  0x23   : > { %v456_v46 = vrot.slane %v454_v38, 4  ;;  %v459_v47 = vrot.slane %v457_v39, 5  ;;  %v465_v50 = vrot.slane %v463_v41, 5  ;;  %v470_v51 = vrot.slane %v468_v42, 4  ;;  %v415_v61 = vld [vmem:[%s2349_s9 + $0x24] sm:$0x1] }
  0x24   : > { %v433_v49 = vrot.slane %v432_v40, 4  ;;  %v473_v52 = vrot.slane %v471_v43, 5  ;;  %v447_v54 = vrot.slane %v446_v45, 4  ;;  %v479_v56 = vrot.slane %v477_v48, 5  ;;  %v416_v0 = vld [vmem:[%s2349_s9 + $0x28] sm:$0xf] }
  0x25   : > { %1999 = vmatmul.mubr.msk.bf16.vlgmr.msra.gmra.mxu1 %vm224_vm1, %v2142_v20  ;;  %v460_v55 = vor.u32 %v459_v47, %v456_v46  ;;  %v417_v1 = vld [vmem:[%s2349_s9 + $0x2c] sm:$0x1]  ;;  %v482_v2 = vshrl.u32 %v414_v60, 16  ;;  %v485_v5 = vshll.u32 %v414_v60, 16  ;;  %v491_v6 = vshll.u32 %v415_v61, 16 }
  0x26   : > { %2017 = vmatpush3.bf16.msra.mxu1 %v685_v15  ;;  %v438_v57 = vsel %vm2383_vm4, %v433_v49, %v437_v32  ;;  %v474_v58 = vor.u32 %v473_v52, %v470_v51  ;;  %2002 = vmatprep.mubr.msk.bf16.mxu1 %vm224_vm1, %v2143_v53  ;;  %v452_v62 = vsel %vm2383_vm4, %v447_v54, %v451_v36  ;;  %v418_v7 = vld [vmem:[%s2349_s9 + $0x30] sm:$0xf]  ;;  %v496_v10 = vshrl.u32 %v416_v0, 16  ;;  %v419_v12 = vld [vmem:[%s2349_s9 + $0x34] sm:$0x1] }
  0x27   : > { %v461_v63 = vrot.slane %v460_v55, 4  ;;  %v1810_v3 = vcombine.low %v438_v57, %v452_v62  ;;  %v484_v9 = vrot.slane %v482_v2, 4  ;;  %v499_v11 = vshll.u32 %v416_v0, 16  ;;  %v2146_v13 = vld [vmem:[%s2676_s1 + $0x8] ss:$0 sps:$4 sm:$0xcc]  }
  0x28   : > { %v475_v4 = vrot.slane %v474_v58, 4  ;;  %v487_v15 = vrot.slane %v485_v5, 5  ;;  %v493_v17 = vrot.slane %v491_v6, 5  ;;  %v505_v18 = vshll.u32 %v417_v1, 16  ;;  %v420_v19 = vld [vmem:[%s2349_s9 + $0x38] sm:$0xf] }
  0x29   : > { %v466_v8 = vsel %vm2383_vm4, %v461_v63, %v465_v50  ;;  %2008 = vmatprep.mubr.msk.bf16.mxu0 %vm224_vm1, %v1810_v3  ;;  %v1120_v20 = vld [vmem:[%s2676_s1 + $0xc] sm:$0x3]  ;;  %v498_v22 = vrot.slane %v496_v10, 4  ;;  %v501_v23 = vrot.slane %v499_v11, 5  ;;  %v421_v24 = vld [vmem:[%s2349_s9 + $0x3c] sm:$0x1] }
  0x2a   : > { %v480_v14 = vsel %vm2383_vm4, %v475_v4, %v479_v56  ;;  %v510_v25 = vshrl.u32 %v418_v7, 16  ;;  %v488_v26 = vor.u32 %v487_v15, %v484_v9  ;;  %v507_v27 = vrot.slane %v505_v18, 5  ;;  %v2145_v37 = vld [vmem:[%s2349_s9 + $0x90] ss:$8 sps:$4 sm:$0xff]   ;;  %v1852_v61 = vld [vmem:[%s2349_s9 + $0x94] sm:$0x1] }
  0x2b   : > { %v1811_v21 = vcombine.low %v466_v8, %v480_v14  ;;  %v513_v28 = vshll.u32 %v418_v7, 16  ;;  %v519_v29 = vshll.u32 %v419_v12, 16  ;;  %v502_v30 = vor.u32 %v501_v23, %v498_v22  ;;  %v2150_v54 = vld [vmem:[%s2349_s9 + $0xb0] ss:$8 sps:$4 sm:$0xff]   ;;  %v1854_v63 = vld [vmem:[%s2349_s9 + $0x9c] sm:$0x1] }
  0x2c   : > { %v512_v31 = vrot.slane %v510_v25, 4  ;;  %v524_v32 = vshrl.u32 %v420_v19, 16  ;;  %v527_v33 = vshll.u32 %v420_v19, 16  ;;  %v489_v34 = vrot.slane %v488_v26, 4  ;;  %v2148_v56 = vld [vmem:[%s2349_s9 + $0xd8] ss:$8 sps:$4 sm:$0xff]  }
  0x2d   : > { %2003 = vmatmul.mubr.msk.bf16.gmra.mxu1 %vm224_vm1, %v2144_v59  ;;  %2009 = vmatmul.mubr.msk.bf16.vlgmr.msra.gmra.mxu0 %vm224_vm1, %v1811_v21  ;;  %v515_v35 = vrot.slane %v513_v28, 5  ;;  %v533_v36 = vshll.u32 %v421_v24, 16  ;;  %v503_v38 = vrot.slane %v502_v30, 4  ;;  %v1022_v41 = vrot.slane %v2146_v13, 2  ;;  %v2151_v59 = vld [vmem:[%s2349_s9 + $0xc0] ss:$8 sps:$4 sm:$0xff]  }
  0x2e   : > { %2027 = vmatpush3.bf16.msra.mxu0 %v2367_v16  ;;  %v526_v39 = vrot.slane %v524_v32, 4  ;;  %v529_v40 = vrot.slane %v527_v33, 5  ;;  %v494_v42 = vsel %vm2383_vm4, %v489_v34, %v493_v17  ;;  %v521_v45 = vrot.slane %v519_v29, 5  ;;  %2018 = vmatprep.mubr.msk.bf16.mxu1 %vm224_vm1, %v2145_v37  ;;  %v2147_v16 = vld [vmem:[%s2349_s9 + $0xa0] ss:$8 sps:$4 sm:$0xff]  }
  0x2f   : > { %2085 = vmatprep.subr.msk.bf16.mxu0 %vm237_vm0, %v1120_v20  ;;  %v516_v43 = vor.u32 %v515_v35, %v512_v31  ;;  %v508_v46 = vsel %vm2383_vm4, %v503_v38, %v507_v27  ;;  %v535_v48 = vrot.slane %v533_v36, 5  ;;  %2084 = vmatprep.subr.msk.bf16.mxu1 %vm237_vm0, %v1022_v41  ;;  %v1036_v51 = vsel %vm237_vm0, %v1022_v41, 0  ;;  %v1851_v60 = vld [vmem:[%s2349_s9 + $0x90] sm:$0xf]  ;;  %v1853_v62 = vld [vmem:[%s2349_s9 + $0x98] sm:$0xf] }
  0x30   : > { %v530_v47 = vor.u32 %v529_v40, %v526_v39  ;;  %v1812_v49 = vcombine.low %v494_v42, %v508_v46  ;;  %v1154_v58 = vsel %vm237_vm0, %v1120_v20, 0  ;;  %v895_v0 = vshrl.u32 %v1851_v60, 16  ;;  %v1855_v4 = vld [vmem:[%s2349_s9 + $0xa0] sm:$0xf]  ;;  %v2149_v5 = vld [vmem:[%s2349_s9 + $0xe8] ss:$8 sps:$4 sm:$0xff]  }
  0x31   : > { %v517_v50 = vrot.slane %v516_v43, 4  ;;  %v898_v1 = vshll.u32 %v1851_v60, 16  ;;  %v904_v2 = vshll.u32 %v1852_v61, 16  ;;  %v909_v3 = vshrl.u32 %v1853_v62, 16  ;;  %v2152_v10 = vld [vmem:[%s2349_s9 + $0xf8] ss:$8 sps:$4 sm:$0xff]  }
  0x32   : > { %v531_v52 = vrot.slane %v530_v47, 4  ;;  %2012 = vmatprep.mubr.msk.bf16.mxu0 %vm224_vm1, %v1812_v49  ;;  %v912_v6 = vshll.u32 %v1853_v62, 16  ;;  %v918_v7 = vshll.u32 %v1854_v63, 16  ;;  %v2154_v8 = vld [vmem:[%s2676_s1 + $0xc] ss:$0 sps:$4 sm:$0xcc]  }
  0x33   : > { %v522_v53 = vsel %vm2383_vm4, %v517_v50, %v521_v45  ;;  %v923_v9 = vshrl.u32 %v1855_v4, 16  ;;  %v897_v11 = vrot.slane %v895_v0, 4  ;;  %v900_v12 = vrot.slane %v898_v1, 5  ;;  %v1856_v15 = vld [vmem:[%s2349_s9 + $0xa4] sm:$0x1] }
  0x34   : > { %v536_v55 = vsel %vm2383_vm4, %v531_v52, %v535_v48  ;;  %v906_v13 = vrot.slane %v904_v2, 5  ;;  %v911_v14 = vrot.slane %v909_v3, 4  ;;  %v914_v17 = vrot.slane %v912_v6, 5  ;;  %v1857_v20 = vld [vmem:[%s2349_s9 + $0xa8] sm:$0xf] }
  0x35   : > { %2019 = vmatmul.mubr.msk.bf16.vlgmr.msra.gmra.mxu1 %vm224_vm1, %v2147_v16  ;;  %v1813_v57 = vcombine.low %v522_v53, %v536_v55  ;;  %v920_v18 = vrot.slane %v918_v7, 5  ;;  %v1262_v19 = vrot.slane %v2154_v8, 2  ;;  %v925_v21 = vrot.slane %v923_v9, 4  ;;  %v1858_v23 = vld [vmem:[%s2349_s9 + $0xac] sm:$0x1] }
  0x36   : > { %2037 = vmatpush3.bf16.msra.mxu1 %v1036_v51  ;;  %2022 = vmatprep.mubr.msk.bf16.mxu1 %vm224_vm1, %v2150_v54  ;;  %v901_v22 = vor.u32 %v900_v12, %v897_v11  ;;  %v926_v24 = vshll.u32 %v1855_v4, 16  ;;  %v932_v25 = vshll.u32 %v1856_v15, 16  ;;  %v937_v26 = vshrl.u32 %v1857_v20, 16  ;;  %v2458_v33 = vld [vmem:[%s2676_s1 + $0x10] sm:$0x3] }
  0x37   : > { %2013 = vmatmul.mubr.msk.bf16.gmra.mxu0 %vm224_vm1, %v1813_v57  ;;  %v915_v27 = vor.u32 %v914_v17, %v911_v14  ;;  %2086 = vmatprep.subr.msk.bf16.mxu1 %vm237_vm0, %v1262_v19  ;;  %v940_v28 = vshll.u32 %v1857_v20, 16  ;;  %v946_v29 = vshll.u32 %v1858_v23, 16  ;;  %v1276_v40 = vsel %vm237_vm0, %v1262_v19, 0  ;;  %v1859_v41 = vld [vmem:[%s2349_s9 + $0xb0] sm:$0xf] }
  0x38   : > { %2028 = vmatprep.mubr.msk.bf16.mxu0 %vm224_vm1, %v2148_v56  ;;  %v902_v30 = vrot.slane %v901_v22, 4  ;;  %v928_v31 = vrot.slane %v926_v24, 5  ;;  %v939_v32 = vrot.slane %v937_v26, 4  ;;  %v934_v35 = vrot.slane %v932_v25, 5  ;;  %v2153_v42 = vld [vmem:[%s2349_s9 + $0x108] ss:$8 sps:$4 sm:$0xff]  }
  0x39   : > { %v916_v34 = vrot.slane %v915_v27, 4  ;;  %v942_v36 = vrot.slane %v940_v28, 5  ;;  %v948_v39 = vrot.slane %v946_v29, 5  ;;  %v1860_v16 = vld [vmem:[%s2349_s9 + $0xb4] sm:$0x1]  ;;  %v951_v51 = vshrl.u32 %v1859_v41, 16 }
  0x3a   : > { %v907_v37 = vsel %vm2383_vm4, %v902_v30, %v906_v13  ;;  %v929_v38 = vor.u32 %v928_v31, %v925_v21  ;;  %v1861_v46 = vld [vmem:[%s2349_s9 + $0xb8] sm:$0xf]  ;;  %v1862_v47 = vld [vmem:[%s2349_s9 + $0xbc] sm:$0x1]  ;;  %v2155_v50 = vld [vmem:[%s2349_s9 + $0x8] ss:$8 sps:$4 sm:$0xff]  }
  0x3b   : > { %v921_v43 = vsel %vm2383_vm4, %v916_v34, %v920_v18  ;;  %v943_v45 = vor.u32 %v942_v36, %v939_v32  ;;  %v954_v52 = vshll.u32 %v1859_v41, 16  ;;  %v1863_v53 = vld [vmem:[%s2349_s9 + $0xc0] sm:$0xf]  ;;  %v960_v55 = vshll.u32 %v1860_v16, 16  ;;  %v1865_v63 = vld [vmem:[%s2349_s9 + $0xc8] sm:$0xf] }
  0x3c   : > { %v1867_v48 = vcombine.low %v907_v37, %v921_v43  ;;  %v930_v49 = vrot.slane %v929_v38, 4  ;;  %v965_v56 = vshrl.u32 %v1861_v46, 16  ;;  %v968_v57 = vshll.u32 %v1861_v46, 16  ;;  %v1866_v4 = vld [vmem:[%s2349_s9 + $0xcc] sm:$0x1] }
  0x3d   : > { %2023 = vmatmul.mubr.msk.bf16.gmra.mxu1 %vm224_vm1, %v2151_v59  ;;  %v944_v54 = vrot.slane %v943_v45, 4  ;;  %v953_v60 = vrot.slane %v951_v51, 4  ;;  %v956_v61 = vrot.slane %v954_v52, 5  ;;  %v974_v62 = vshll.u32 %v1862_v47, 16  ;;  %v2156_v18 = vld [vmem:[%s2349_s9 + $0x18] ss:$8 sps:$4 sm:$0xff]  }
  0x3e   : > { %2038 = vmatprep.mubr.msk.bf16.mxu1 %vm224_vm1, %v1867_v48  ;;  %v935_v59 = vsel %vm2383_vm4, %v930_v49, %v934_v35  ;;  %v962_v1 = vrot.slane %v960_v55, 5  ;;  %v967_v2 = vrot.slane %v965_v56, 4  ;;  %v970_v3 = vrot.slane %v968_v57, 5  ;;  %v2157_v24 = vld [vmem:[%s2349_s9 + $0x28] ss:$8 sps:$4 sm:$0xff]  }
  0x3f   : > { %2029 = vmatmul.mubr.msk.bf16.vlgmr.msra.gmra.mxu0 %vm224_vm1, %v2149_v5  ;;  %v949_v0 = vsel %vm2383_vm4, %v944_v54, %v948_v39  ;;  %v957_v6 = vor.u32 %v956_v61, %v953_v60  ;;  %v976_v7 = vrot.slane %v974_v62, 5  ;;  %v979_v8 = vshrl.u32 %v1863_v53, 16  ;;  %v1909_v32 = vld [vmem:[%s2349_s9 + $0x8] sm:$0xf]  ;;  %v1910_v35 = vld [vmem:[%s2349_s9 + $0xc] sm:$0x1] }
  0x40   : > { %2047 = vmatpush3.bf16.msra.mxu0 %v1154_v58  ;;  %2032 = vmatprep.mubr.msk.bf16.mxu0 %vm224_vm1, %v2152_v10  ;;  %v1864_v58 = vld [vmem:[%s2349_s9 + $0xc4] sm:$0x1]  ;;  %v1868_v5 = vcombine.low %v935_v59, %v949_v0  ;;  %v971_v9 = vor.u32 %v970_v3, %v967_v2  ;;  %v982_v10 = vshll.u32 %v1863_v53, 16  ;;  %v993_v12 = vshrl.u32 %v1865_v63, 16  ;;  %v1911_v36 = vld [vmem:[%s2349_s9 + $0x10] sm:$0xf] }
  0x41   : > { %2087 = vmatprep.subr.msk.bf16.mxu0 %vm237_vm0, %v2458_v33  ;;  %v988_v11 = vshll.u32 %v1864_v58, 16  ;;  %v958_v13 = vrot.slane %v957_v6, 4  ;;  %v981_v14 = vrot.slane %v979_v8, 4  ;;  %v996_v15 = vshll.u32 %v1865_v63, 16  ;;  %v2159_v39 = vld [vmem:[%s2349_s9 + $0x50] ss:$8 sps:$4 sm:$0xff]  }
  0x42   : > { %v1002_v17 = vshll.u32 %v1866_v4, 16  ;;  %v972_v19 = vrot.slane %v971_v9, 4  ;;  %v984_v20 = vrot.slane %v982_v10, 5  ;;  %v995_v21 = vrot.slane %v993_v12, 4  ;;  %v1913_v47 = vld [vmem:[%s2349_s9 + $0x18] sm:$0xf] }
  0x43   : > { %v963_v22 = vsel %vm2383_vm4, %v958_v13, %v962_v1  ;;  %v998_v23 = vrot.slane %v996_v15, 5  ;;  %v990_v27 = vrot.slane %v988_v11, 5  ;;  %v1505_v28 = vsel %vm237_vm0, %v2458_v33, 0  ;;  %v1914_v52 = vld [vmem:[%s2349_s9 + $0x1c] sm:$0x1] }
  0x44   : > { %v977_v25 = vsel %vm2383_vm4, %v972_v19, %v976_v7  ;;  %v985_v26 = vor.u32 %v984_v20, %v981_v14  ;;  %v1004_v31 = vrot.slane %v1002_v17, 5  ;;  %v1368_v37 = vshrl.u32 %v1909_v32, 16  ;;  %v2158_v54 = vld [vmem:[%s2349_s9 + $0x38] ss:$8 sps:$4 sm:$0xff]   ;;  %v1916_v58 = vld [vmem:[%s2349_s9 + $0x24] sm:$0x1] }
  0x45   : > { %2039 = vmatmul.mubr.msk.bf16.vlgmr.msra.gmra.mxu1 %vm224_vm1, %v1868_v5  ;;  %v1869_v29 = vcombine.low %v963_v22, %v977_v25  ;;  %v999_v30 = vor.u32 %v998_v23, %v995_v21  ;;  %v1371_v41 = vshll.u32 %v1909_v32, 16  ;;  %v1382_v43 = vshrl.u32 %v1911_v36, 16  ;;  %v1915_v57 = vld [vmem:[%s2349_s9 + $0x20] sm:$0xf]  ;;  %v2161_v14 = vld [vmem:[%s2349_s9 + $0x70] ss:$8 sps:$4 sm:$0xff]  }
  0x46   : > { %2057 = vmatpush3.bf16.msra.mxu1 %v1276_v40  ;;  %v986_v34 = vrot.slane %v985_v26, 4  ;;  %v1912_v40 = vld [vmem:[%s2349_s9 + $0x14] sm:$0x1]  ;;  %v1370_v45 = vrot.slane %v1368_v37, 4  ;;  %v1385_v16 = vshll.u32 %v1911_v36, 16  ;;  %v1396_v60 = vshrl.u32 %v1913_v47, 16 }
  0x47   : > { %2033 = vmatmul.mubr.msk.bf16.gmra.mxu0 %vm224_vm1, %v2153_v42  ;;  %2042 = vmatprep.mubr.msk.bf16.mxu1 %vm224_vm1, %v1869_v29  ;;  %v1000_v38 = vrot.slane %v999_v30, 4  ;;  %v1377_v42 = vshll.u32 %v1910_v35, 16  ;;  %v1391_v46 = vshll.u32 %v1912_v40, 16  ;;  %v1373_v49 = vrot.slane %v1371_v41, 5  ;;  %v2160_v6 = vld [vmem:[%s2349_s9 + $0x60] ss:$8 sps:$4 sm:$0xff]  }
  0x48   : > { %2048 = vmatprep.mubr.msk.bf16.mxu0 %vm224_vm1, %v2155_v50  ;;  %v991_v33 = vsel %vm2383_vm4, %v986_v34, %v990_v27  ;;  %v1384_v51 = vrot.slane %v1382_v43, 4  ;;  %v1387_v55 = vrot.slane %v1385_v16, 5  ;;  %v1399_v61 = vshll.u32 %v1913_v47, 16  ;;  %v1917_v15 = vld [vmem:[%s2349_s9 + $0x28] sm:$0xf] }
  0x49   : > { %v1005_v48 = vsel %vm2383_vm4, %v1000_v38, %v1004_v31  ;;  %v1379_v50 = vrot.slane %v1377_v42, 5  ;;  %v1393_v56 = vrot.slane %v1391_v46, 5  ;;  %v1374_v59 = vor.u32 %v1373_v49, %v1370_v45  ;;  %v1918_v19 = vld [vmem:[%s2349_s9 + $0x2c] sm:$0x1]  ;;  %v1919_v20 = vld [vmem:[%s2349_s9 + $0x30] sm:$0xf] }
  0x4a   : > { %v1870_v53 = vcombine.low %v991_v33, %v1005_v48  ;;  %v1405_v62 = vshll.u32 %v1914_v52, 16  ;;  %v1388_v63 = vor.u32 %v1387_v55, %v1384_v51  ;;  %v1410_v0 = vshrl.u32 %v1915_v57, 16  ;;  %v1920_v21 = vld [vmem:[%s2349_s9 + $0x34] sm:$0x1]  ;;  %v1921_v26 = vld [vmem:[%s2349_s9 + $0x38] sm:$0xf] }
  0x4b   : > { %v1413_v1 = vshll.u32 %v1915_v57, 16  ;;  %v1419_v2 = vshll.u32 %v1916_v58, 16  ;;  %v1375_v3 = vrot.slane %v1374_v59, 4  ;;  %v1398_v4 = vrot.slane %v1396_v60, 4  ;;  %v1922_v31 = vld [vmem:[%s2349_s9 + $0x3c] sm:$0x1] }
  0x4c   : > { %v1401_v5 = vrot.slane %v1399_v61, 5  ;;  %v1389_v7 = vrot.slane %v1388_v63, 4  ;;  %v1412_v8 = vrot.slane %v1410_v0, 4  ;;  %v1407_v12 = vrot.slane %v1405_v62, 5  ;;  %v1923_v37 = vld [vmem:[%s2349_s9 + $0x40] sm:$0xf] }
  0x4d   : > { %2043 = vmatmul.mubr.msk.bf16.gmra.mxu1 %vm224_vm1, %v1870_v53  ;;  %v1415_v9 = vrot.slane %v1413_v1, 5  ;;  %v1380_v10 = vsel %vm2383_vm4, %v1375_v3, %v1379_v50  ;;  %v1421_v13 = vrot.slane %v1419_v2, 5  ;;  %v1427_v25 = vshll.u32 %v1917_v15, 16  ;;  %v1924_v42 = vld [vmem:[%s2349_s9 + $0x44] sm:$0x1] }
  0x4e   : > { %2058 = vmatprep.mubr.msk.bf16.mxu1 %vm224_vm1, %v2159_v39  ;;  %v1402_v11 = vor.u32 %v1401_v5, %v1398_v4  ;;  %v1394_v17 = vsel %vm2383_vm4, %v1389_v7, %v1393_v56  ;;  %v1438_v29 = vshrl.u32 %v1919_v20, 16  ;;  %v1441_v30 = vshll.u32 %v1919_v20, 16 }
  0x4f   : > { %2049 = vmatmul.mubr.msk.bf16.vlgmr.msra.gmra.mxu0 %vm224_vm1, %v2156_v18  ;;  %v1416_v18 = vor.u32 %v1415_v9, %v1412_v8  ;;  %v1925_v22 = vcombine.low %v1380_v10, %v1394_v17  ;;  %v1429_v35 = vrot.slane %v1427_v25, 5  ;;  %v1447_v36 = vshll.u32 %v1920_v21, 16 }
  0x50   : > { %2067 = vmatpush3.bf16.msra.mxu0 %v1505_v28  ;;  %2052 = vmatprep.mubr.msk.bf16.mxu0 %vm224_vm1, %v2157_v24  ;;  %v1403_v23 = vrot.slane %v1402_v11, 4  ;;  %v1424_v24 = vshrl.u32 %v1917_v15, 16  ;;  %v1433_v28 = vshll.u32 %v1918_v19, 16  ;;  %v1440_v40 = vrot.slane %v1438_v29, 4 }
  0x51   : > { %v1417_v27 = vrot.slane %v1416_v18, 4  ;;  %v1443_v41 = vrot.slane %v1441_v30, 5  ;;  %v1449_v45 = vrot.slane %v1447_v36, 5  ;;  %v1452_v16 = vshrl.u32 %v1921_v26, 16 }
  0x52   : > { %v1408_v32 = vsel %vm2383_vm4, %v1403_v23, %v1407_v12  ;;  %v1426_v34 = vrot.slane %v1424_v24, 4  ;;  %v1435_v39 = vrot.slane %v1433_v28, 5  ;;  %v1455_v47 = vshll.u32 %v1921_v26, 16 }
  0x53   : > { %v1422_v38 = vsel %vm2383_vm4, %v1417_v27, %v1421_v13  ;;  %v1444_v46 = vor.u32 %v1443_v41, %v1440_v40  ;;  %v1461_v48 = vshll.u32 %v1922_v31, 16  ;;  %v1466_v49 = vshrl.u32 %v1923_v37, 16 }
  0x54   : > { %v1926_v43 = vcombine.low %v1408_v32, %v1422_v38  ;;  %v1430_v33 = vor.u32 %v1429_v35, %v1426_v34  ;;  %v1454_v51 = vrot.slane %v1452_v16, 4  ;;  %v1469_v52 = vshll.u32 %v1923_v37, 16 }
  0x55   : > { %2059 = vmatmul.mubr.msk.bf16.vlgmr.msra.gmra.mxu1 %vm224_vm1, %v2160_v6  ;;  %v1475_v53 = vshll.u32 %v1924_v42, 16  ;;  %v1445_v55 = vrot.slane %v1444_v46, 4  ;;  %v1457_v56 = vrot.slane %v1455_v47, 5  ;;  %v1468_v57 = vrot.slane %v1466_v49, 4 }
  0x56   : > { %2062 = vmatprep.mubr.msk.bf16.mxu1 %vm224_vm1, %v2161_v14  ;;  %v1431_v50 = vrot.slane %v1430_v33, 4  ;;  %v1471_v59 = vrot.slane %v1469_v52, 5  ;;  %v1463_v62 = vrot.slane %v1461_v48, 5 }
  0x57   : > { %2053 = vmatmul.mubr.msk.bf16.gmra.mxu0 %vm224_vm1, %v2158_v54  ;;  %v2162_v54 = vld [vmem:[%s2349_s9 + $0x80] ss:$8 sps:$4 sm:$0xff]   ;;  %v1450_v60 = vsel %vm2383_vm4, %v1445_v55, %v1449_v45  ;;  %v1458_v61 = vor.u32 %v1457_v56, %v1454_v51  ;;  %v1477_v1 = vrot.slane %v1475_v53, 5  ;;  %s2597_s9 = scalar_lea.hbm %s2677_s2, %s1940_s5 }
  0x58   : > { %2068 = vmatprep.mubr.msk.bf16.mxu0 %vm224_vm1, %v1925_v22  ;;  %v1436_v58 = vsel %vm2383_vm4, %v1431_v50, %v1435_v39  ;;  %v1472_v0 = vor.u32 %v1471_v59, %v1468_v57 }
  0x59   : > { %v1927_v63 = vcombine.low %v1436_v58, %v1450_v60  ;;  %v1459_v2 = vrot.slane %v1458_v61, 4 }
  0x5a   : > { %v1473_v3 = vrot.slane %v1472_v0, 4 }
  0x5b   : > { %v1464_v4 = vsel %vm2383_vm4, %v1459_v2, %v1463_v62 }
  0x5c   : > { %v1478_v5 = vsel %vm2383_vm4, %v1473_v3, %v1477_v1 }
  0x5d   : > { %2063 = vmatmul.mubr.msk.bf16.gmra.mxu1 %vm224_vm1, %v2162_v54  ;;  %v1928_v6 = vcombine.low %v1464_v4, %v1478_v5 }
  0x5f   : > { %2069 = vmatmul.mubr.msk.bf16.vlgmr.msra.gmra.mxu0 %vm224_vm1, %v1926_v43 }
  0x60   : > { %2072 = vmatprep.mubr.msk.bf16.mxu0 %vm224_vm1, %v1927_v63 }
  0x67   : > { %2073 = vmatmul.mubr.msk.bf16.gmra.mxu0 %vm224_vm1, %v1928_v6 }
  0xdc   : > { %v1990_v9 = vpop.f32.mrf.mxu0 }
  0xdd   : > { %v1994_v7 = vpop.f32.mrf.mxu1 }
  0xde   : > { %v275_v12 = vpop.f32.mrf.mxu0 }
  0xdf   : > { %v291_v8 = vpop.f32.mrf.mxu1 }
  0xe0   : > { %v1991_v15 = vpop.f32.mrf.mxu0 }
  0xe1   : > { %v2549_v10 = vpop.f32.mrf.mxu1 }
  0xe2   : > { %v278_v19 = vpop.f32.mrf.mxu0 }
  0xe3   : > { %v2551_v11 = vpop.f32.mrf.mxu1 }
  0xe5   : > { %v2000_v13 = vpop.f32.mrf.mxu1 }
  0xe6   : > { %v384_v46 = vadd.f32 %v2000_v13, %v1990_v9 }
  0xe7   : > { %v375_v14 = vpop.f32.mrf.mxu1 }
  0xe8   : > { %v376_v49 = vadd.f32 %v375_v14, %v275_v12 }
  0xe9   : > { %v2001_v17 = vpop.f32.mrf.mxu1 }
  0xea   : > { %v387_v53 = vadd.f32 %v2001_v17, %v1991_v15 }
  0xeb   : > { %v378_v18 = vpop.f32.mrf.mxu1 }
  0xec   : > { %v379_v58 = vadd.f32 %v378_v18, %v278_v19 }
  0xed   : > { %v2004_v20 = vpop.f32.mrf.mxu1  ;;  %v2010_v44 = vpop.f32.mrf.mxu0 }
  0xee   : > { %v632_v52 = vadd.f32 %v2010_v44, %v384_v46  ;;  %v400_v0 = vadd.f32 %v2004_v20, %v1994_v7 }
  0xef   : > { %v391_v21 = vpop.f32.mrf.mxu1  ;;  %v599_v22 = vpop.f32.mrf.mxu0 }
  0xf0   : > { %v630_v56 = vadd.f32 %v599_v22, %v376_v49  ;;  %v392_v6 = vadd.f32 %v391_v21, %v291_v8 }
  0xf1   : > { %v2005_v23 = vpop.f32.mrf.mxu1  ;;  %v2011_v24 = vpop.f32.mrf.mxu0 }
  0xf2   : > { %v633_v61 = vadd.f32 %v2011_v24, %v387_v53  ;;  %v403_v19 = vadd.f32 %v2005_v23, %v2549_v10 }
  0xf3   : > { %v394_v25 = vpop.f32.mrf.mxu1  ;;  %v602_v26 = vpop.f32.mrf.mxu0 }
  0xf4   : > { %v631_v2 = vadd.f32 %v602_v26, %v379_v58  ;;  %v395_v44 = vadd.f32 %v394_v25, %v2551_v11 }
  0xf5   : > { %v2020_v27 = vpop.f32.mrf.mxu1 }
  0xf6   : > { %v754_v57 = vadd.f32 %v2020_v27, %v632_v52 }
  0xf7   : > { %v721_v28 = vpop.f32.mrf.mxu1  ;;  %v2014_v29 = vpop.f32.mrf.mxu0 }
  0xf8   : > { %v752_v60 = vadd.f32 %v721_v28, %v630_v56  ;;  %v636_v17 = vadd.f32 %v2014_v29, %v400_v0 }
  0xf9   : > { %v2021_v30 = vpop.f32.mrf.mxu1  ;;  %v615_v31 = vpop.f32.mrf.mxu0 }
  0xfa   : > { %v755_v3 = vadd.f32 %v2021_v30, %v633_v61  ;;  %v634_v24 = vadd.f32 %v615_v31, %v392_v6 }
  0xfb   : > { %v724_v32 = vpop.f32.mrf.mxu1  ;;  %v2015_v34 = vpop.f32.mrf.mxu0 }
  0xfc   : > { %v753_v13 = vadd.f32 %v724_v32, %v631_v2 }
  0xfd   : > { %v2024_v35 = vpop.f32.mrf.mxu1  ;;  %v618_v36 = vpop.f32.mrf.mxu0 }
  0xfe   : > { %v758_v26 = vadd.f32 %v2024_v35, %v636_v17  ;;  %v635_v10 = vadd.f32 %v618_v36, %v395_v44 }
  0xff   : > { %v737_v37 = vpop.f32.mrf.mxu1  ;;  %v2030_v38 = vpop.f32.mrf.mxu0 }
 0x100   : > { %v872_v1 = vadd.f32 %v2030_v38, %v754_v57  ;;  %v756_v32 = vadd.f32 %v737_v37, %v634_v24 }
 0x101   : > { %v2553_v39 = vpop.f32.mrf.mxu1  ;;  %v839_v40 = vpop.f32.mrf.mxu0 }
 0x102   : > { %v870_v9 = vadd.f32 %v839_v40, %v752_v60  ;;  %v637_v40 = vadd.f32 %v2015_v34, %v403_v19 }
 0x103   : > { %v2031_v41 = vpop.f32.mrf.mxu0  ;;  %v740_v42 = vpop.f32.mrf.mxu1 }
 0x104   : > { %v873_v22 = vadd.f32 %v2031_v41, %v755_v3  ;;  %v759_v35 = vadd.f32 %v2553_v39, %v637_v40 }
 0x105   : > { %v842_v43 = vpop.f32.mrf.mxu0  ;;  %v2040_v45 = vpop.f32.mrf.mxu1 }
 0x106   : > { %v1105_v12 = vadd.f32 %v2040_v45, %v872_v1  ;;  %v871_v28 = vadd.f32 %v842_v43, %v753_v13  ;;  %v757_v43 = vadd.f32 %v740_v42, %v635_v10 }
 0x107   : > { %v2034_v33 = vpop.f32.mrf.mxu0  ;;  %v1072_v47 = vpop.f32.mrf.mxu1 }
 0x108   : > { %v1103_v18 = vadd.f32 %v1072_v47, %v870_v9  ;;  %v876_v41 = vadd.f32 %v2034_v33, %v758_v26 }
 0x109   : > { %v855_v16 = vpop.f32.mrf.mxu0  ;;  %v2041_v50 = vpop.f32.mrf.mxu1 }
 0x10a   : > { %v1106_v8 = vadd.f32 %v2041_v50, %v873_v22  ;;  %v874_v49 = vadd.f32 %v855_v16, %v756_v32 }
 0x10b   : > { %v2555_v48 = vpop.f32.mrf.mxu0  ;;  %v1075_v55 = vpop.f32.mrf.mxu1 }
 0x10c   : > { %v1104_v23 = vadd.f32 %v1075_v55, %v871_v28  ;;  %v877_v33 = vadd.f32 %v2555_v48, %v759_v35 }
 0x10d   : > { %v2557_v51 = vpop.f32.mrf.mxu0  ;;  %v2044_v63 = vpop.f32.mrf.mxu1 }
 0x10e   : > { %v1109_v50 = vadd.f32 %v2044_v63, %v876_v41  ;;  %v875_v57 = vadd.f32 %v2557_v51, %v757_v43 }
 0x10f   : > { %v2050_v54 = vpop.f32.mrf.mxu0  ;;  %v1088_v5 = vpop.f32.mrf.mxu1 }
 0x110   : > { %v1223_v27 = vadd.f32 %v2050_v54, %v1105_v12  ;;  %v1107_v54 = vadd.f32 %v1088_v5, %v874_v49 }
 0x111   : > { %v1190_v59 = vpop.f32.mrf.mxu0  ;;  %v2045_v15 = vpop.f32.mrf.mxu1 }
 0x112   : > { %v1221_v29 = vadd.f32 %v1190_v59, %v1103_v18  ;;  %v1110_v60 = vadd.f32 %v2045_v15, %v877_v33 }
 0x113   : > { %v2051_v62 = vpop.f32.mrf.mxu0  ;;  %v1091_v20 = vpop.f32.mrf.mxu1 }
 0x114   : > { %v1224_v45 = vadd.f32 %v2051_v62, %v1106_v8  ;;  %v1108_v61 = vadd.f32 %v1091_v20, %v875_v57 }
 0x115   : > { %v1193_v4 = vpop.f32.mrf.mxu0  ;;  %v2060_v30 = vpop.f32.mrf.mxu1 }
 0x116   : > { %v1345_v38 = vadd.f32 %v2060_v30, %v1223_v27  ;;  %v1222_v37 = vadd.f32 %v1193_v4, %v1104_v23 }
 0x117   : > { %v2054_v14 = vpop.f32.mrf.mxu0  ;;  %v1312_v25 = vpop.f32.mrf.mxu1 }
 0x118   : > { %v1343_v31 = vadd.f32 %v1312_v25, %v1221_v29  ;;  %v1227_v59 = vadd.f32 %v2054_v14, %v1109_v50 }
 0x119   : > { %v1206_v7 = vpop.f32.mrf.mxu0  ;;  %v2061_v47 = vpop.f32.mrf.mxu1 }
 0x11a   : > { %v1346_v34 = vadd.f32 %v2061_v47, %v1224_v45  ;;  %v1225_v48 = vadd.f32 %v1206_v7, %v1107_v54 }
 0x11b   : > { %v2055_v21 = vpop.f32.mrf.mxu0  ;;  %v1315_v36 = vpop.f32.mrf.mxu1 }
 0x11c   : > { %v1344_v42 = vadd.f32 %v1315_v36, %v1222_v37  ;;  %v1228_v15 = vadd.f32 %v2055_v21, %v1110_v60 }
 0x11d   : > { %v1209_v11 = vpop.f32.mrf.mxu0  ;;  %v2064_v58 = vpop.f32.mrf.mxu1 }
 0x11e   : > { %v1349_v2 = vadd.f32 %v2064_v58, %v1227_v59  ;;  %v1226_v17 = vadd.f32 %v1209_v11, %v1108_v61 }
 0x11f   : > { %v2070_v46 = vpop.f32.mrf.mxu0  ;;  %v1328_v0 = vpop.f32.mrf.mxu1 }
 0x120   : > { %v1574_v52 = vadd.f32 %v2070_v46, %v1345_v38  ;;  %v1347_v14 = vadd.f32 %v1328_v0, %v1225_v48 }
 0x121   : > { %v1541_v53 = vpop.f32.mrf.mxu0  ;;  %v2065_v6 = vpop.f32.mrf.mxu1 }
 0x122   : > { %v1637_v55 = vpack.c.bf16 %v1574_v52, %v1574_v52  ;;  %v1572_v56 = vadd.f32 %v1541_v53, %v1343_v31  ;;  %v1604_v3 = vmul.f32 %v1574_v52, %v1574_v52  ;;  %v1584_v18 = vsel %vm1580_vm6, %v1574_v52, 0.0 }
 0x123   : > { %v2071_v39 = vpop.f32.mrf.mxu0  ;;  %v1331_v22 = vpop.f32.mrf.mxu1  ;;  %v1350_v30 = vadd.f32 %v2065_v6, %v1228_v15 }
 0x124   : > { %1646 = vst.msk [vmem:[%s2568_s4 + $0x8] sm:$0xf] %vm1643_vm5, %v1637_v55  ;;  %v1635_v16 = vpack.c.bf16 %v1572_v56, %v1572_v56  ;;  %v1575_v62 = vadd.f32 %v2071_v39, %v1346_v34  ;;  %v1602_v51 = vmul.f32 %v1572_v56, %v1572_v56  ;;  %v1581_v4 = vsel %vm1580_vm6, %v1572_v56, 0.0 }
 0x125   : > { %v1544_v63 = vpop.f32.mrf.mxu0  ;;  %v1613_v27 = vsel %vm1580_vm6, %v1604_v3, 0.0  ;;  %v1348_v40 = vadd.f32 %v1331_v22, %v1226_v17 }
 0x126   : > { %1644 = vst.msk [vmem:[%s2568_s4] sm:$0xf] %vm1643_vm5, %v1635_v16  ;;  %v1573_v1 = vadd.f32 %v1544_v63, %v1344_v42  ;;  %v1638_v5 = vpack.c.bf16 %v1575_v62, %v1575_v62  ;;  %v1610_v7 = vsel %vm1580_vm6, %v1602_v51, 0.0  ;;  %v1605_v20 = vmul.f32 %v1575_v62, %v1575_v62 }
 0x127   : > { %v2074_v44 = vpop.f32.mrf.mxu0  ;;  %v1586_v32 = vsel %vm1580_vm6, %v1575_v62, 0.0 }
 0x128   : > { %v1582_v9 = vsel %vm1580_vm6, %v1573_v1, 0.0  ;;  %v1603_v12 = vmul.f32 %v1573_v1, %v1573_v1  ;;  %v1636_v13 = vpack.c.bf16 %v1573_v1, %v1573_v1  ;;  %1647 = vst.msk [vmem:[%s2568_s4 + $0xc] sm:$0xf] %vm1643_vm5, %v1638_v5  ;;  %v1578_v26 = vadd.f32 %v2074_v44, %v1349_v2 }
 0x129   : > { %v1583_v19 = vadd.f32 %v1582_v9, %v1581_v4  ;;  %v1557_v21 = vpop.f32.mrf.mxu0  ;;  %v1615_v25 = vsel %vm1580_vm6, %v1605_v20, 0.0 }
 0x12a   : > { %v1611_v24 = vsel %vm1580_vm6, %v1603_v12, 0.0  ;;  %1645 = vst.msk [vmem:[%s2568_s4 + $0x4] sm:$0xf] %vm1643_vm5, %v1636_v13  ;;  %v1641_v29 = vpack.c.bf16 %v1578_v26, %v1578_v26  ;;  %v1576_v38 = vadd.f32 %v1557_v21, %v1347_v14  ;;  %v1608_v53 = vmul.f32 %v1578_v26, %v1578_v26 }
 0x12b   : > { %v1585_v28 = vadd.f32 %v1584_v18, %v1583_v19  ;;  %v1612_v8 = vadd.f32 %v1611_v24, %v1610_v7  ;;  %v2075_v11 = vpop.f32.mrf.mxu0  ;;  %v1592_v56 = vsel %vm1580_vm6, %v1578_v26, 0.0 }
 0x12c   : > { %1650 = vst.msk [vmem:[%s2568_s4 + $0x18] sm:$0xf] %vm1643_vm5, %v1641_v29  ;;  %v1588_v41 = vsel %vm1580_vm6, %v1576_v38, 0.0  ;;  %v1606_v31 = vmul.f32 %v1576_v38, %v1576_v38  ;;  %v1639_v35 = vpack.c.bf16 %v1576_v38, %v1576_v38  ;;  %v1579_v46 = vadd.f32 %v2075_v11, %v1350_v30 }
 0x12d   : > { %v1614_v10 = vadd.f32 %v1613_v27, %v1612_v8  ;;  %v1587_v23 = vadd.f32 %v1586_v32, %v1585_v28  ;;  %v1560_v47 = vpop.f32.mrf.mxu0 }
 0x12e   : > { %v1617_v49 = vsel %vm1580_vm6, %v1606_v31, 0.0  ;;  %1648 = vst.msk [vmem:[%s2568_s4 + $0x10] sm:$0xf] %vm1643_vm5, %v1639_v35  ;;  %v1577_v50 = vadd.f32 %v1560_v47, %v1348_v40  ;;  %v1642_v37 = vpack.c.bf16 %v1579_v46, %v1579_v46  ;;  %v1609_v33 = vmul.f32 %v1579_v46, %v1579_v46 }
 0x12f   : > { %v1589_v43 = vadd.f32 %v1588_v41, %v1587_v23  ;;  %v1616_v45 = vadd.f32 %v1615_v25, %v1614_v10 }
 0x130   : > { %v1590_v34 = vsel %vm1580_vm6, %v1577_v50, 0.0  ;;  %v1607_v36 = vmul.f32 %v1577_v50, %v1577_v50  ;;  %v1640_v54 = vpack.c.bf16 %v1577_v50, %v1577_v50  ;;  %1651 = vst.msk [vmem:[%s2568_s4 + $0x1c] sm:$0xf] %vm1643_vm5, %v1642_v37 }
 0x131   : > { %v1618_v52 = vadd.f32 %v1617_v49, %v1616_v45  ;;  %v1591_v55 = vadd.f32 %v1590_v34, %v1589_v43 }
 0x132   : > { %v1619_v57 = vsel %vm1580_vm6, %v1607_v36, 0.0  ;;  %1649 = vst.msk [vmem:[%s2568_s4 + $0x14] sm:$0xf] %vm1643_vm5, %v1640_v54 }
 0x133   : > { %v1593_v39 = vadd.f32 %v1592_v56, %v1591_v55  ;;  %v1620_v42 = vadd.f32 %v1619_v57, %v1618_v52 }
 0x134   : > { %2176 = shalt.err (!%p2173_p3)
}
 0x135   : > { %s2177_s24 = scalar_lea.hbm %s2597_s9, 512  ;;  %s2181_s27 = scalar_lea.hbm %s2677_s2, 1024 }
 0x136   : > { %p2178_p4 = scmp.ne.s32.totalorder %s2597_s9, %s2177_s24  ;;  %p2182_p9 = scmp.lt.s32.totalorder %s2597_s9, %s2677_s2 }
 0x137   : > { %p2183_p10 = scmp.lt.s32.totalorder %s2181_s27, %s2177_s24 }
 0x138   : > { %p2179_p7 = pnand %p2178_p4, %p2317_p5 }
 0x139   : > { %p2184_p11 = por %p2183_p10, %p2182_p9 }
 0x13a   : > { %p2180_p8 = pneg %p2179_p7 }
 0x13c   : > { %p2185_p12 = pnand %p2184_p11, %p2180_p8 }
 0x13e   : > { %2188 = shalt.err (!%p2185_p12)
}
 0x13f   : > { %s2256_s4 = smov 64   ;;  %s2257_s5 = smov 4   ;;  %v1621_v58 = vsel %vm1580_vm6, %v1608_v53, 0.0  ;;  %v1594_v59 = vsel %vm1580_vm6, %v1579_v46, 0.0  ;;  %v1623_v61 = vsel %vm1580_vm6, %v1609_v33, 0.0  ;;  %vm1631_vm7 = vcmask 1040384  }
 0x140   : > { %2089 = dma.vmem_to_hbm [thread:$0]  (%p2317_p5), %s2599_s6, 512, %s2597_s9, %s1653_s10, %s2256_s4, %s2256_s4, %s2257_s5   ;;  %v1595_v16 = vadd.f32 %v1594_v59, %v1593_v39  ;;  %v1622_v60 = vadd.f32 %v1621_v58, %v1620_v42  ;;  %vm1633_vm8 = vcmask 58368  }
 0x141   : > { %s1783_s7 = sshll.u32 %s2562_s29, 1  ;;  %s1937_s6 = sshll.u32 %s2300_s16, 5 }
 0x142   : > { %v1596_v62 = vrot.slane %v1595_v16, 4  ;;  %v1624_v63 = vadd.f32 %v1623_v61, %v1622_v60  ;;  %s174_s8 = scalar_lea.vmem [#allocation4], %s1783_s7  ;;  %s2639_s17 = scalar_lea.hbm %s2678_s3, %s1937_s6 }
 0x143   : > { %s1687_s9 = sshll.u32 %s174_s8, 4  ;;  %s1658_s19 = scalar_lea.sflag [#allocation5], %s2562_s29  ;;  %s1688_s9 = int_to_ptr.vmem [resolvable:$true] %s1687_s9 }
 0x144   : > { %v1597_v0 = vadd.f32 %v1596_v62, %v1595_v16  ;;  %v1625_v48 = vrot.slane %v1624_v63, 4  ;;  %s2189_s20 = scalar_lea.vmem %s1688_s9, 32  ;;  %s2258_s16 = smov [#allocation4]  }
 0x145   : > { %p2190_p13 = scmp.ne.s32.totalorder %s1688_s9, %s2189_s20  ;;  %s2193_s24 = sshll.u32 %s2258_s16, 4  ;;  %s2194_s24 = int_to_ptr.vmem [resolvable:$false] %s2193_s24 }
 0x146   : > { %v1598_v51 = vrot.slane %v1597_v0, 2  ;;  %v1626_v1 = vadd.f32 %v1625_v48, %v1624_v63  ;;  %s2195_s25 = scalar_lea.vmem %s2194_s24, 64  ;;  %p2196_p2 = scmp.lt.s32.totalorder %s1688_s9, %s2194_s24 }
 0x147   : > { %p2191_p0 = pnand %p2190_p13, %p2317_p5  ;;  %p2197_p3 = scmp.lt.s32.totalorder %s2195_s25, %s2189_s20 }
 0x148   : > { %v1599_v2 = vadd.f32 %v1598_v51, %v1597_v0  ;;  %v1627_v3 = vrot.slane %v1626_v1, 2 }
 0x149   : > { %p2192_p1 = pneg %p2191_p0  ;;  %p2198_p4 = por %p2197_p3, %p2196_p2 }
 0x14a   : > { %v1600_v4 = vrot.slane %v1599_v2, 1  ;;  %v1628_v5 = vadd.f32 %v1627_v3, %v1626_v1 }
 0x14b   : > { %p2199_p7 = pnand %p2198_p4, %p2192_p1 }
 0x14c   : > { %v1629_v6 = vrot.slane %v1628_v5, 1  ;;  %v1601_v9 = vadd.f32 %v1600_v4, %v1599_v2 }
 0x14e   : > { %v1630_v12 = vadd.f32 %v1629_v6, %v1628_v5 }
 0x150   : > { %v1632_v13 = vsel %vm1631_vm7, %v1601_v9, %v1630_v12 }
 0x151   : > { %1634 = vst.msk [vmem:[%s174_s8] sm:$0x3] %vm1633_vm8, %v1632_v13 }
 0x152   : > { %2202 = shalt.err (!%p2199_p7)
}
 0x153   : > { %s2203_s26 = scalar_lea.hbm %s2639_s17, 32  ;;  %s2207_s28 = scalar_lea.hbm %s2678_s3, 64 }
 0x154   : > { %p2204_p8 = scmp.ne.s32.totalorder %s2639_s17, %s2203_s26  ;;  %p2208_p11 = scmp.lt.s32.totalorder %s2639_s17, %s2678_s3 }
 0x155   : > { %p2209_p12 = scmp.lt.s32.totalorder %s2207_s28, %s2203_s26 }
 0x156   : > { %p2205_p9 = pnand %p2204_p8, %p2317_p5 }
 0x157   : > { %p2210_p13 = por %p2209_p12, %p2208_p11 }
 0x158   : > { %p2206_p10 = pneg %p2205_p9 }
 0x15a   : > { %p2211_p0 = pnand %p2210_p13, %p2206_p10 }
 0x15c   : > { %2214 = shalt.err (!%p2211_p0)
}
 0x15d   : > { %2090 = dma.vmem_to_hbm [thread:$0]  (%p2317_p5), %s1688_s9, 32, %s2639_s17, %s1658_s19  }
 0x15e PF: > { %p2100_p1 = scmp.ge.s32.totalorder %s2253_s15, 2  ;;  %s1699_s5 = sand.u32 1, %s2241_s12  }
 0x15f   : > { %s1700_s7 = scalar_lea.sflag [#allocation3], %s1699_s5 }
 0x160   : > { %p2094_p2 = pnand %p2100_p1, %p2321_p6 }
 0x162   : > { %p2095_p3 = pneg %p2094_p2 }
 0x164   : > { %2232 = dma.done.wait (%p2095_p3), %s1700_s7, 512  }
 0x165   : > { %2234 = vsyncadd (%p2095_p3), %s1700_s7, 4294966784  ;;  %s1709_s6 = scalar_lea.sflag [#allocation5], %s1699_s5 }
 0x166   : > { %2236 = dma.done.wait (%p2095_p3), %s1709_s6, 32  }
 0x167   : > { %2238 = vsyncadd (%p2095_p3), %s1709_s6, 4294967264  ;;  %p17_p5 = scmp.ge.s32.totalorder %s2304_s18, 4   ;;  %s2683_s12 = smov %s2245_s13 }
 0x168   : > { %s2684_s13 = smov %s2249_s14  ;;  %s2685_s14 = smov %s2315_s21 }
 0x169   : > { %s2686_s15 = smov %s2304_s18  ;;  %19 = sbr.rel (!%p17_p5) target bundleno = 5 (0x5), region = 85 }
 0x16e   :  { %1714 = vsyncpa [#allocation3], 1 }
 0x16f   :  { %1716 = vsyncpa [#allocation3 + $0x1], 1 }
 0x170   :  { %1717 = vsyncpa [#allocation5], 1 }
 0x171   :  { %1719 = vsyncpa [#allocation5 + $0x1], 1 }

</bundles_post_ra>
